<compile_context>
chip_gen: v6e
topology: v6e:2x2x1
jax: 0.10.0
libtpu: 0.0.40
codegen_flags: <defaults>
</compile_context>

<pallas_src>
import jax
import jax.numpy as jnp
from jax.experimental import pallas as pl
from jax.experimental.pallas import tpu as pltpu

BN_EPS = 1e-5

_VMEM_LIMIT = 48 * 1024 * 1024        # explicit scoped-VMEM request per pallas_call
_TILE_VMEM_BUDGET = 20 * 1024 * 1024  # budget for tile-proportional bytes per pass
_MIN_GRID_STEPS = 8                   # keep >= this many grid steps when possible
_MAX_TILE = 8192                      # lane-tile upper bound
_BF16_MIN_FINT = 128                  # bf16 MXU only for deep layers


def _pick_tile(hw_p: int, bytes_per_lane: int, batch: int) -> int:
    """Largest multiple-of-128 divisor of hw_p under the VMEM/parallelism caps."""
    cap = min(_MAX_TILE, hw_p)
    v_cap = (_TILE_VMEM_BUDGET // max(int(bytes_per_lane), 1)) // 128 * 128
    p_cap = (hw_p * batch // _MIN_GRID_STEPS) // 128 * 128
    cap = max(128, min(cap, max(v_cap, 128), max(p_cap, 128)))
    t = cap
    while t > 128 and hw_p % t:
        t -= 128
    return t


def _const_spec(shape):
    """BlockSpec for a grid-invariant operand; single-buffered when supported."""
    index_map = lambda b, t: (0,) * len(shape)
    try:
        return pl.BlockSpec(shape, index_map, pipeline_mode=pl.Buffered(1))
    except (TypeError, AttributeError):
        return pl.BlockSpec(shape, index_map)


# ---------------- pass 1: bias-free convs -> packed BN partial sums ----------------
def _gx_stats_kernel(g_ref, x_ref, wg_ref, wx_ref, stats_ref):
    g = g_ref[0]                                           # (F_g, T)
    x = x_ref[0]                                           # (F_l, T)
    vg = jnp.dot(wg_ref[...], g.astype(wg_ref.dtype),
                 preferred_element_type=jnp.float32)       # (F_int, T)
    vx = jnp.dot(wx_ref[...], x.astype(wx_ref.dtype),
                 preferred_element_type=jnp.float32)
    # Padded lanes are zero inputs and there is no bias -> they contribute
    # exactly 0 to all four sums.  One packed store / one write-back DMA.
    stats_ref[0, 0] = jnp.concatenate(
        [jnp.sum(vg, axis=1, keepdims=True),
         jnp.sum(vg * vg, axis=1, keepdims=True),
         jnp.sum(vx, axis=1, keepdims=True),
         jnp.sum(vx * vx, axis=1, keepdims=True)], axis=0)  # (4*F_int, 1)


# -------- pass 2: BN-folded convs + ReLU + psi conv -> P map + P partial sums -------
def _make_psi_kernel(hw: int, tile: int, need_mask: bool):
    def kernel(g_ref, x_ref, wg_ref, wx_ref, b_ref, wp_ref, p_ref, stats_ref):
        g = g_ref[0]
        x = x_ref[0]
        # BN affines already folded into wg'/wx' and the single bias b.
        s = jnp.dot(wg_ref[...], g.astype(wg_ref.dtype),
                    preferred_element_type=jnp.float32)
        s = s + jnp.dot(wx_ref[...], x.astype(wx_ref.dtype),
                        preferred_element_type=jnp.float32)
        s = jnp.maximum(s + b_ref[...], 0.0)                # (F_int, T)
        p = jnp.dot(wp_ref[...], s.astype(wp_ref.dtype),
                    preferred_element_type=jnp.float32)     # (1, T)
        p_ref[0] = p
        if need_mask:
            lane = jax.lax.broadcasted_iota(jnp.int32, (1, tile), 1)
            valid = (pl.program_id(1) * tile + lane) < hw
            p = jnp.where(valid, p, 0.0)
        stats_ref[0, 0] = jnp.concatenate(
            [jnp.sum(p, axis=1, keepdims=True),
             jnp.sum(p * p, axis=1, keepdims=True)], axis=0)  # (2, 1)
    return kernel


# ---------------------- pass 3: out = x * sigmoid(aP*P + cP) ----------------------
def _apply_kernel(ac_ref, x_ref, p_ref, o_ref):
    a = ac_ref[0]                                           # SMEM scalars
    c = ac_ref[1]
    psi = jax.nn.sigmoid(p_ref[0] * a + c)                  # (1, T)
    o_ref[0] = (x_ref[0] * psi).astype(o_ref.dtype)         # (F_l, T)


# --------------------------------- module forward ---------------------------------
def attention_block_forward(g_nchw, x_nchw, params):
    """Attention_block.forward: NCHW in -> NCHW out (training-mode BN)."""
    B, F_g, H, W = g_nchw.shape
    Bx, F_l, Hx, Wx = x_nchw.shape
    assert (B, H, W) == (Bx, Hx, Wx)
    F_int = params["wg"].shape[0]

    HW = H * W
    HW_p = ((HW + 127) // 128) * 128
    pad = HW_p - HW

    # Free contiguous reshape NCHW -> (B, C, H*W); pad lanes to a 128 multiple.
    g3 = g_nchw.reshape(B, F_g, HW)
    x3 = x_nchw.reshape(B, F_l, HW)
    if pad:
        g3 = jnp.pad(g3, ((0, 0), (0, 0), (0, pad)))
        x3 = jnp.pad(x3, ((0, 0), (0, 0), (0, pad)))

    use_bf16 = F_int >= _BF16_MIN_FINT
    w_dtype = jnp.bfloat16 if use_bf16 else jnp.float32

    # Conv biases feeding a BatchNorm cancel exactly -> bg/bx/bpsi never used.
    wg = params["wg"].astype(w_dtype)
    wx = params["wx"].astype(w_dtype)
    wp = params["wpsi"].astype(w_dtype)

    ibytes = 4  # activations arrive f32
    bpl1 = 2 * (F_g + F_l) * ibytes + 2 * F_int * 4                 # dbuf in + vG/vX
    bpl2 = 2 * (F_g + F_l) * ibytes + 3 * F_int * 4 + 2 * 4         # + S + dbuf P
    bpl3 = 4 * F_l * ibytes + 2 * 4                                 # x in/out dbuf + P
    T1 = _pick_tile(HW_p, bpl1, B); nT1 = HW_p // T1
    T2 = _pick_tile(HW_p, bpl2, B); nT2 = HW_p // T2
    T3 = _pick_tile(HW_p, bpl3, B); nT3 = HW_p // T3

    cparams = pltpu.CompilerParams(
        dimension_semantics=("parallel", "parallel"),
        vmem_limit_bytes=_VMEM_LIMIT)

    # ---------------- pass 1: conv stats ----------------
    stats1 = pl.pallas_call(
        _gx_stats_kernel,
        grid=(B, nT1),
        in_specs=[pl.BlockSpec((1, F_g, T1), lambda b, t: (b, 0, t)),
                  pl.BlockSpec((1, F_l, T1), lambda b, t: (b, 0, t)),
                  _const_spec((F_int, F_g)),
                  _const_spec((F_int, F_l))],
        out_specs=pl.BlockSpec((1, 1, 4 * F_int, 1), lambda b, t: (b, t, 0, 0)),
        out_shape=jax.ShapeDtypeStruct((B, nT1, 4 * F_int, 1), jnp.float32),
        compiler_params=cparams,
    )(g3, x3, wg, wx)

    n = jnp.float32(B * HW)
    s = stats1.sum(axis=(0, 1))[:, 0]                       # (4*F_int,)

    def _fold(sv, sq, gamma, beta):
        mean = sv / n
        var = jnp.maximum(sq / n - mean * mean, 0.0)        # biased (training BN)
        a = gamma * jax.lax.rsqrt(var + BN_EPS)
        return a, beta - mean * a

    aG, cG = _fold(s[0:F_int], s[F_int:2 * F_int],
                   params["bn_g_gamma"], params["bn_g_beta"])
    aX, cX = _fold(s[2 * F_int:3 * F_int], s[3 * F_int:4 * F_int],
                   params["bn_x_gamma"], params["bn_x_beta"])

    # Fold the BN affines into the conv weights + one combined bias.
    wg2 = (aG[:, None] * params["wg"]).astype(w_dtype)
    wx2 = (aX[:, None] * params["wx"]).astype(w_dtype)
    b2 = (cG + cX).reshape(F_int, 1).astype(jnp.float32)

    # ---------------- pass 2: psi map + its stats ----------------
    P, stats2 = pl.pallas_call(
        _make_psi_kernel(HW, T2, pad > 0),
        grid=(B, nT2),
        in_specs=[pl.BlockSpec((1, F_g, T2), lambda b, t: (b, 0, t)),
                  pl.BlockSpec((1, F_l, T2), lambda b, t: (b, 0, t)),
                  _const_spec((F_int, F_g)),
                  _const_spec((F_int, F_l)),
                  _const_spec((F_int, 1)),
                  _const_spec((1, F_int))],
        out_specs=[pl.BlockSpec((1, 1, T2), lambda b, t: (b, 0, t)),
                   pl.BlockSpec((1, 1, 2, 1), lambda b, t: (b, t, 0, 0))],
        out_shape=[jax.ShapeDtypeStruct((B, 1, HW_p), jnp.float32),
                   jax.ShapeDtypeStruct((B, nT2, 2, 1), jnp.float32)],
        compiler_params=cparams,
    )(g3, x3, wg2, wx2, b2, wp)

    sP = stats2[:, :, 0, 0].sum()
    sPP = stats2[:, :, 1, 0].sum()
    meanP = sP / n
    varP = jnp.maximum(sPP / n - meanP * meanP, 0.0)
    aP = params["bn_p_gamma"][0] * jax.lax.rsqrt(varP + BN_EPS)
    cP = params["bn_p_beta"][0] - meanP * aP
    ac = jnp.stack([aP, cP]).astype(jnp.float32)            # SMEM scalars for pass 3

    # ---------------- pass 3: gate x with sigmoid(BN(P)) ----------------
    out3 = pl.pallas_call(
        _apply_kernel,
        grid=(B, nT3),
        in_specs=[pl.BlockSpec(memory_space=pltpu.MemorySpace.SMEM),
                  pl.BlockSpec((1, F_l, T3), lambda b, t: (b, 0, t)),
                  pl.BlockSpec((1, 1, T3), lambda b, t: (b, 0, t))],
        out_specs=pl.BlockSpec((1, F_l, T3), lambda b, t: (b, 0, t)),
        out_shape=jax.ShapeDtypeStruct((B, F_l, HW_p), x_nchw.dtype),
        compiler_params=cparams,
    )(ac, x3, P)

    if pad:
        out3 = out3[:, :, :HW]
    return out3.reshape(B, F_l, H, W)


# ------------------------------ params / reference ------------------------------
def init_attention_params(key, F_g, F_l, F_int):
    k0, k1, k2, kb0, kb1, kb2 = jax.random.split(key, 6)

    def conv_w(k, cout, cin):
        bound = 1.0 / jnp.sqrt(jnp.float32(cin))
        return jax.random.uniform(k, (cout, cin), jnp.float32, -bound, bound)

    return dict(
        wg=conv_w(k0, F_int, F_g),
        bg=jax.random.uniform(kb0, (F_int,), jnp.float32, -0.1, 0.1),
        bn_g_gamma=jnp.ones((F_int,), jnp.float32),
        bn_g_beta=jnp.zeros((F_int,), jnp.float32),
        wx=conv_w(k1, F_int, F_l),
        bx=jax.random.uniform(kb1, (F_int,), jnp.float32, -0.1, 0.1),
        bn_x_gamma=jnp.ones((F_int,), jnp.float32),
        bn_x_beta=jnp.zeros((F_int,), jnp.float32),
        wpsi=conv_w(k2, 1, F_int),
        bpsi=jax.random.uniform(kb2, (1,), jnp.float32, -0.1, 0.1),
        bn_p_gamma=jnp.ones((1,), jnp.float32),
        bn_p_beta=jnp.zeros((1,), jnp.float32),
    )


def _reference(g, x, p):
    """Pure-JAX reference of the PyTorch module (training-mode BN forward)."""
    def conv1x1(t, w, b):
        return jnp.einsum("oc,bchw->bohw", w, t) + b[None, :, None, None]

    def bn(t, gamma, beta):
        mean = t.mean(axis=(0, 2, 3), keepdims=True)
        var = t.var(axis=(0, 2, 3), keepdims=True)  # biased
        tn = (t - mean) / jnp.sqrt(var + BN_EPS)
        return tn * gamma[None, :, None, None] + beta[None, :, None, None]

    G = bn(conv1x1(g, p["wg"], p["bg"]), p["bn_g_gamma"], p["bn_g_beta"])
    X = bn(conv1x1(x, p["wx"], p["bx"]), p["bn_x_gamma"], p["bn_x_beta"])
    S = jnp.maximum(G + X, 0.0)
    P = bn(conv1x1(S, p["wpsi"], p["bpsi"]), p["bn_p_gamma"], p["bn_p_beta"])
    return x * jax.nn.sigmoid(P)


if __name__ == "__main__":
    key = jax.random.PRNGKey(0)
    kg, kx, kp = jax.random.split(key, 3)

    B, F_g, F_l, F_int, H, W = 2, 4, 4, 8, 16, 16
    g = jax.random.normal(kg, (B, F_g, H, W), jnp.float32)
    x = jax.random.normal(kx, (B, F_l, H, W), jnp.float32)
    params = init_attention_params(kp, F_g, F_l, F_int)

    fwd = jax.jit(attention_block_forward)
    y = jax.block_until_ready(fwd(g, x, params))

    assert y.shape == (B, F_l, H, W), y.shape
    assert bool(jnp.all(jnp.isfinite(y)))

    y_ref = _reference(g, x, params)
    assert bool(jnp.allclose(y, y_ref, rtol=1e-3, atol=1e-4)), (
        float(jnp.max(jnp.abs(y - y_ref))))

    print("KERNEL_OK")
</pallas_src>

<mosaic_0001>
module attributes {stable_mosaic.version = 11 : i64} {
  func.func @kernel(%arg0: i32, %arg1: i32, %arg2: memref<1x4x128xf32, #tpu.memory_space<vmem>>, %arg3: memref<1x4x128xf32, #tpu.memory_space<vmem>>, %arg4: memref<8x4xf32, #tpu.memory_space<vmem>>, %arg5: memref<8x4xf32, #tpu.memory_space<vmem>>, %arg6: memref<8x1xf32, #tpu.memory_space<vmem>>, %arg7: memref<1x8xf32, #tpu.memory_space<vmem>>, %arg8: memref<1x1x128xf32, #tpu.memory_space<vmem>>, %arg9: memref<1x1x2x1xf32, #tpu.memory_space<vmem>>) attributes {dimension_semantics = [#tpu.dimension_semantics<parallel>, #tpu.dimension_semantics<parallel>], iteration_bounds = array<i64: 2, 2>, scalar_prefetch = 0 : i64, scratch_operands = 0 : i64, tpu.core_type = #tpu.core_type<tc>, window_params = [{transform_indices = @transform_0, window_bounds = array<i64: 1, 4, 128>}, {transform_indices = @transform_1, window_bounds = array<i64: 1, 4, 128>}, {pipeline_mode = #tpu.pipeline_mode<synchronous>, transform_indices = @transform_2, window_bounds = array<i64: 8, 4>}, {pipeline_mode = #tpu.pipeline_mode<synchronous>, transform_indices = @transform_3, window_bounds = array<i64: 8, 4>}, {pipeline_mode = #tpu.pipeline_mode<synchronous>, transform_indices = @transform_4, window_bounds = array<i64: 8, 1>}, {pipeline_mode = #tpu.pipeline_mode<synchronous>, transform_indices = @transform_5, window_bounds = array<i64: 1, 8>}, {transform_indices = @transform_6, window_bounds = array<i64: 1, 1, 128>}, {transform_indices = @transform_7, window_bounds = array<i64: 1, 1, 2, 1>}]} {
    %c0 = arith.constant 0 : index
    %c0_0 = arith.constant 0 : index
    %c0_1 = arith.constant 0 : index
    %0 = vector.load %arg2[%c0, %c0_0, %c0_1] : memref<1x4x128xf32, #tpu.memory_space<vmem>>, vector<1x4x128xf32>
    %1 = vector.shape_cast %0 : vector<1x4x128xf32> to vector<4x128xf32>
    %c0_2 = arith.constant 0 : index
    %c0_3 = arith.constant 0 : index
    %c0_4 = arith.constant 0 : index
    %2 = vector.load %arg3[%c0_2, %c0_3, %c0_4] : memref<1x4x128xf32, #tpu.memory_space<vmem>>, vector<1x4x128xf32>
    %3 = vector.shape_cast %2 : vector<1x4x128xf32> to vector<4x128xf32>
    %c0_5 = arith.constant 0 : index
    %c0_6 = arith.constant 0 : index
    %4 = vector.load %arg4[%c0_5, %c0_6] : memref<8x4xf32, #tpu.memory_space<vmem>>, vector<8x4xf32>
    %cst = arith.constant dense<0.000000e+00> : vector<8x128xf32>
    %5 = tpu.matmul %4, %1, %cst {dimension_numbers = #tpu.dot_dimension_numbers<[1], [0], [0], [1], [0, 0, 1, 1], [], []>} : vector<8x4xf32>, vector<4x128xf32>, vector<8x128xf32> -> vector<8x128xf32>
    %c0_7 = arith.constant 0 : index
    %c0_8 = arith.constant 0 : index
    %6 = vector.load %arg5[%c0_7, %c0_8] : memref<8x4xf32, #tpu.memory_space<vmem>>, vector<8x4xf32>
    %cst_9 = arith.constant dense<0.000000e+00> : vector<8x128xf32>
    %7 = tpu.matmul %6, %3, %cst_9 {dimension_numbers = #tpu.dot_dimension_numbers<[1], [0], [0], [1], [0, 0, 1, 1], [], []>} : vector<8x4xf32>, vector<4x128xf32>, vector<8x128xf32> -> vector<8x128xf32>
    %8 = arith.addf %5, %7 : vector<8x128xf32>
    %c0_10 = arith.constant 0 : index
    %c0_11 = arith.constant 0 : index
    %9 = vector.load %arg6[%c0_10, %c0_11] : memref<8x1xf32, #tpu.memory_space<vmem>>, vector<8x1xf32>
    %10 = vector.broadcast %9 : vector<8x1xf32> to vector<8x128xf32>
    %11 = arith.addf %8, %10 : vector<8x128xf32>
    %cst_12 = arith.constant 0.000000e+00 : f32
    %12 = vector.broadcast %cst_12 : f32 to vector<8x128xf32>
    %13 = arith.maximumf %11, %12 : vector<8x128xf32>
    %c0_13 = arith.constant 0 : index
    %c0_14 = arith.constant 0 : index
    %14 = vector.load %arg7[%c0_13, %c0_14] : memref<1x8xf32, #tpu.memory_space<vmem>>, vector<1x8xf32>
    %cst_15 = arith.constant dense<0.000000e+00> : vector<1x128xf32>
    %15 = tpu.matmul %14, %13, %cst_15 {dimension_numbers = #tpu.dot_dimension_numbers<[1], [0], [0], [1], [0, 0, 1, 1], [], []>} : vector<1x8xf32>, vector<8x128xf32>, vector<1x128xf32> -> vector<1x128xf32>
    %c0_16 = arith.constant 0 : index
    %c0_17 = arith.constant 0 : index
    %c0_18 = arith.constant 0 : index
    %16 = vector.load %arg8[%c0_16, %c0_17, %c0_18] : memref<1x1x128xf32, #tpu.memory_space<vmem>>, vector<1x1x128xf32>
    %17 = vector.shape_cast %16 : vector<1x1x128xf32> to vector<1x128xf32>
    %18 = vector.shape_cast %15 : vector<1x128xf32> to vector<1x1x128xf32>
    tpu.vector_store %arg8[%c0_16, %c0_17, %c0_18], %18 {strides = array<i32>} : memref<1x1x128xf32, #tpu.memory_space<vmem>>, vector<1x1x128xf32>,
    %cst_19 = arith.constant dense<0.000000e+00> : vector<1xf32>
    %19 = vector.multi_reduction <add>, %15, %cst_19 [1] : vector<1x128xf32> to vector<1xf32>
    %20 = vector.shape_cast %19 : vector<1xf32> to vector<1x1xf32>
    %21 = arith.mulf %15, %15 : vector<1x128xf32>
    %cst_20 = arith.constant dense<0.000000e+00> : vector<1xf32>
    %22 = vector.multi_reduction <add>, %21, %cst_20 [1] : vector<1x128xf32> to vector<1xf32>
    %23 = vector.shape_cast %22 : vector<1xf32> to vector<1x1xf32>
    %24 = tpu.concatenate %20, %23 in 0 : vector<1x1xf32>, vector<1x1xf32> -> vector<2x1xf32>
    %c0_21 = arith.constant 0 : index
    %c0_22 = arith.constant 0 : index
    %c0_23 = arith.constant 0 : index
    %c0_24 = arith.constant 0 : index
    %25 = vector.load %arg9[%c0_21, %c0_22, %c0_23, %c0_24] : memref<1x1x2x1xf32, #tpu.memory_space<vmem>>, vector<1x1x2x1xf32>
    %26 = vector.shape_cast %25 : vector<1x1x2x1xf32> to vector<2x1xf32>
    %27 = vector.shape_cast %24 : vector<2x1xf32> to vector<1x1x2x1xf32>
    tpu.vector_store %arg9[%c0_21, %c0_22, %c0_23, %c0_24], %27 {strides = array<i32>} : memref<1x1x2x1xf32, #tpu.memory_space<vmem>>, vector<1x1x2x1xf32>,
    return
  }
  func.func @transform_0(%arg0: i32, %arg1: i32) -> (i32, i32, i32) {
    %c0_i32 = arith.constant 0 : i32
    %c0_i32_0 = arith.constant 0 : i32
    return %arg0, %c0_i32, %arg1 : i32, i32, i32
  }
  func.func @transform_1(%arg0: i32, %arg1: i32) -> (i32, i32, i32) {
    %c0_i32 = arith.constant 0 : i32
    %c0_i32_0 = arith.constant 0 : i32
    return %arg0, %c0_i32, %arg1 : i32, i32, i32
  }
  func.func @transform_2(%arg0: i32, %arg1: i32) -> (i32, i32) {
    %c0_i32 = arith.constant 0 : i32
    %c0_i32_0 = arith.constant 0 : i32
    %c0_i32_1 = arith.constant 0 : i32
    return %c0_i32, %c0_i32_0 : i32, i32
  }
  func.func @transform_3(%arg0: i32, %arg1: i32) -> (i32, i32) {
    %c0_i32 = arith.constant 0 : i32
    %c0_i32_0 = arith.constant 0 : i32
    %c0_i32_1 = arith.constant 0 : i32
    return %c0_i32, %c0_i32_0 : i32, i32
  }
  func.func @transform_4(%arg0: i32, %arg1: i32) -> (i32, i32) {
    %c0_i32 = arith.constant 0 : i32
    %c0_i32_0 = arith.constant 0 : i32
    %c0_i32_1 = arith.constant 0 : i32
    return %c0_i32, %c0_i32_0 : i32, i32
  }
  func.func @transform_5(%arg0: i32, %arg1: i32) -> (i32, i32) {
    %c0_i32 = arith.constant 0 : i32
    %c0_i32_0 = arith.constant 0 : i32
    %c0_i32_1 = arith.constant 0 : i32
    return %c0_i32, %c0_i32_0 : i32, i32
  }
  func.func @transform_6(%arg0: i32, %arg1: i32) -> (i32, i32, i32) {
    %c0_i32 = arith.constant 0 : i32
    %c0_i32_0 = arith.constant 0 : i32
    return %arg0, %c0_i32, %arg1 : i32, i32, i32
  }
  func.func @transform_7(%arg0: i32, %arg1: i32) -> (i32, i32, i32, i32) {
    %c0_i32 = arith.constant 0 : i32
    %c0_i32_0 = arith.constant 0 : i32
    %c0_i32_1 = arith.constant 0 : i32
    return %arg0, %arg1, %c0_i32, %c0_i32_0 : i32, i32, i32, i32
  }
}

module attributes {stable_mosaic.version = 11 : i64} {
  func.func @_gx_stats_kernel(%arg0: i32, %arg1: i32, %arg2: memref<1x4x128xf32, #tpu.memory_space<vmem>>, %arg3: memref<1x4x128xf32, #tpu.memory_space<vmem>>, %arg4: memref<8x4xf32, #tpu.memory_space<vmem>>, %arg5: memref<8x4xf32, #tpu.memory_space<vmem>>, %arg6: memref<1x1x32x1xf32, #tpu.memory_space<vmem>>) attributes {dimension_semantics = [#tpu.dimension_semantics<parallel>, #tpu.dimension_semantics<parallel>], iteration_bounds = array<i64: 2, 2>, scalar_prefetch = 0 : i64, scratch_operands = 0 : i64, tpu.core_type = #tpu.core_type<tc>, window_params = [{transform_indices = @transform_0, window_bounds = array<i64: 1, 4, 128>}, {transform_indices = @transform_1, window_bounds = array<i64: 1, 4, 128>}, {pipeline_mode = #tpu.pipeline_mode<synchronous>, transform_indices = @transform_2, window_bounds = array<i64: 8, 4>}, {pipeline_mode = #tpu.pipeline_mode<synchronous>, transform_indices = @transform_3, window_bounds = array<i64: 8, 4>}, {transform_indices = @transform_4, window_bounds = array<i64: 1, 1, 32, 1>}]} {
    %c0 = arith.constant 0 : index
    %c0_0 = arith.constant 0 : index
    %c0_1 = arith.constant 0 : index
    %0 = vector.load %arg2[%c0, %c0_0, %c0_1] : memref<1x4x128xf32, #tpu.memory_space<vmem>>, vector<1x4x128xf32>
    %1 = vector.shape_cast %0 : vector<1x4x128xf32> to vector<4x128xf32>
    %c0_2 = arith.constant 0 : index
    %c0_3 = arith.constant 0 : index
    %c0_4 = arith.constant 0 : index
    %2 = vector.load %arg3[%c0_2, %c0_3, %c0_4] : memref<1x4x128xf32, #tpu.memory_space<vmem>>, vector<1x4x128xf32>
    %3 = vector.shape_cast %2 : vector<1x4x128xf32> to vector<4x128xf32>
    %c0_5 = arith.constant 0 : index
    %c0_6 = arith.constant 0 : index
    %4 = vector.load %arg4[%c0_5, %c0_6] : memref<8x4xf32, #tpu.memory_space<vmem>>, vector<8x4xf32>
    %cst = arith.constant dense<0.000000e+00> : vector<8x128xf32>
    %5 = tpu.matmul %4, %1, %cst {dimension_numbers = #tpu.dot_dimension_numbers<[1], [0], [0], [1], [0, 0, 1, 1], [], []>} : vector<8x4xf32>, vector<4x128xf32>, vector<8x128xf32> -> vector<8x128xf32>
    %c0_7 = arith.constant 0 : index
    %c0_8 = arith.constant 0 : index
    %6 = vector.load %arg5[%c0_7, %c0_8] : memref<8x4xf32, #tpu.memory_space<vmem>>, vector<8x4xf32>
    %cst_9 = arith.constant dense<0.000000e+00> : vector<8x128xf32>
    %7 = tpu.matmul %6, %3, %cst_9 {dimension_numbers = #tpu.dot_dimension_numbers<[1], [0], [0], [1], [0, 0, 1, 1], [], []>} : vector<8x4xf32>, vector<4x128xf32>, vector<8x128xf32> -> vector<8x128xf32>
    %cst_10 = arith.constant dense<0.000000e+00> : vector<8xf32>
    %8 = vector.multi_reduction <add>, %5, %cst_10 [1] : vector<8x128xf32> to vector<8xf32>
    %9 = vector.shape_cast %8 : vector<8xf32> to vector<8x1xf32>
    %10 = arith.mulf %5, %5 : vector<8x128xf32>
    %cst_11 = arith.constant dense<0.000000e+00> : vector<8xf32>
    %11 = vector.multi_reduction <add>, %10, %cst_11 [1] : vector<8x128xf32> to vector<8xf32>
    %12 = vector.shape_cast %11 : vector<8xf32> to vector<8x1xf32>
    %cst_12 = arith.constant dense<0.000000e+00> : vector<8xf32>
    %13 = vector.multi_reduction <add>, %7, %cst_12 [1] : vector<8x128xf32> to vector<8xf32>
    %14 = vector.shape_cast %13 : vector<8xf32> to vector<8x1xf32>
    %15 = arith.mulf %7, %7 : vector<8x128xf32>
    %cst_13 = arith.constant dense<0.000000e+00> : vector<8xf32>
    %16 = vector.multi_reduction <add>, %15, %cst_13 [1] : vector<8x128xf32> to vector<8xf32>
    %17 = vector.shape_cast %16 : vector<8xf32> to vector<8x1xf32>
    %18 = tpu.concatenate %9, %12, %14, %17 in 0 : vector<8x1xf32>, vector<8x1xf32>, vector<8x1xf32>, vector<8x1xf32> -> vector<32x1xf32>
    %c0_14 = arith.constant 0 : index
    %c0_15 = arith.constant 0 : index
    %c0_16 = arith.constant 0 : index
    %c0_17 = arith.constant 0 : index
    %19 = vector.load %arg6[%c0_14, %c0_15, %c0_16, %c0_17] : memref<1x1x32x1xf32, #tpu.memory_space<vmem>>, vector<1x1x32x1xf32>
    %20 = vector.shape_cast %19 : vector<1x1x32x1xf32> to vector<32x1xf32>
    %21 = vector.shape_cast %18 : vector<32x1xf32> to vector<1x1x32x1xf32>
    tpu.vector_store %arg6[%c0_14, %c0_15, %c0_16, %c0_17], %21 {strides = array<i32>} : memref<1x1x32x1xf32, #tpu.memory_space<vmem>>, vector<1x1x32x1xf32>,
    return
  }
  func.func @transform_0(%arg0: i32, %arg1: i32) -> (i32, i32, i32) {
    %c0_i32 = arith.constant 0 : i32
    %c0_i32_0 = arith.constant 0 : i32
    return %arg0, %c0_i32, %arg1 : i32, i32, i32
  }
  func.func @transform_1(%arg0: i32, %arg1: i32) -> (i32, i32, i32) {
    %c0_i32 = arith.constant 0 : i32
    %c0_i32_0 = arith.constant 0 : i32
    return %arg0, %c0_i32, %arg1 : i32, i32, i32
  }
  func.func @transform_2(%arg0: i32, %arg1: i32) -> (i32, i32) {
    %c0_i32 = arith.constant 0 : i32
    %c0_i32_0 = arith.constant 0 : i32
    %c0_i32_1 = arith.constant 0 : i32
    return %c0_i32, %c0_i32_0 : i32, i32
  }
  func.func @transform_3(%arg0: i32, %arg1: i32) -> (i32, i32) {
    %c0_i32 = arith.constant 0 : i32
    %c0_i32_0 = arith.constant 0 : i32
    %c0_i32_1 = arith.constant 0 : i32
    return %c0_i32, %c0_i32_0 : i32, i32
  }
  func.func @transform_4(%arg0: i32, %arg1: i32) -> (i32, i32, i32, i32) {
    %c0_i32 = arith.constant 0 : i32
    %c0_i32_0 = arith.constant 0 : i32
    %c0_i32_1 = arith.constant 0 : i32
    return %arg0, %arg1, %c0_i32, %c0_i32_0 : i32, i32, i32, i32
  }
}

module attributes {stable_mosaic.version = 11 : i64} {
  func.func @_apply_kernel(%arg0: i32, %arg1: i32, %arg2: memref<2xf32, #tpu.memory_space<smem>>, %arg3: memref<1x4x128xf32, #tpu.memory_space<vmem>>, %arg4: memref<1x1x128xf32, #tpu.memory_space<vmem>>, %arg5: memref<1x4x128xf32, #tpu.memory_space<vmem>>) attributes {dimension_semantics = [#tpu.dimension_semantics<parallel>, #tpu.dimension_semantics<parallel>], iteration_bounds = array<i64: 2, 2>, scalar_prefetch = 0 : i64, scratch_operands = 0 : i64, tpu.core_type = #tpu.core_type<tc>, window_params = [{transform_indices = @transform_0, window_bounds = array<i64: 2>}, {transform_indices = @transform_1, window_bounds = array<i64: 1, 4, 128>}, {transform_indices = @transform_2, window_bounds = array<i64: 1, 1, 128>}, {transform_indices = @transform_3, window_bounds = array<i64: 1, 4, 128>}]} {
    %c0 = arith.constant 0 : index
    %0 = memref.load %arg2[%c0] : memref<2xf32, #tpu.memory_space<smem>>
    %c1 = arith.constant 1 : index
    %1 = memref.load %arg2[%c1] : memref<2xf32, #tpu.memory_space<smem>>
    %c0_0 = arith.constant 0 : index
    %c0_1 = arith.constant 0 : index
    %c0_2 = arith.constant 0 : index
    %2 = vector.load %arg4[%c0_0, %c0_1, %c0_2] : memref<1x1x128xf32, #tpu.memory_space<vmem>>, vector<1x1x128xf32>
    %3 = vector.shape_cast %2 : vector<1x1x128xf32> to vector<1x128xf32>
    %4 = vector.broadcast %0 : f32 to vector<1x128xf32>
    %5 = arith.mulf %3, %4 : vector<1x128xf32>
    %6 = vector.broadcast %1 : f32 to vector<1x128xf32>
    %7 = arith.addf %5, %6 : vector<1x128xf32>
    %8 = arith.negf %7 : vector<1x128xf32>
    %9 = math.exp %8 : vector<1x128xf32>
    %cst = arith.constant 1.000000e+00 : f32
    %10 = vector.broadcast %cst : f32 to vector<1x128xf32>
    %11 = arith.addf %10, %9 : vector<1x128xf32>
    %12 = arith.divf %10, %11 : vector<1x128xf32>
    %c0_3 = arith.constant 0 : index
    %c0_4 = arith.constant 0 : index
    %c0_5 = arith.constant 0 : index
    %13 = vector.load %arg3[%c0_3, %c0_4, %c0_5] : memref<1x4x128xf32, #tpu.memory_space<vmem>>, vector<1x4x128xf32>
    %14 = vector.shape_cast %13 : vector<1x4x128xf32> to vector<4x128xf32>
    %15 = vector.broadcast %12 : vector<1x128xf32> to vector<4x128xf32>
    %16 = arith.mulf %14, %15 : vector<4x128xf32>
    %c0_6 = arith.constant 0 : index
    %c0_7 = arith.constant 0 : index
    %c0_8 = arith.constant 0 : index
    %17 = vector.load %arg5[%c0_6, %c0_7, %c0_8] : memref<1x4x128xf32, #tpu.memory_space<vmem>>, vector<1x4x128xf32>
    %18 = vector.shape_cast %17 : vector<1x4x128xf32> to vector<4x128xf32>
    %19 = vector.shape_cast %16 : vector<4x128xf32> to vector<1x4x128xf32>
    tpu.vector_store %arg5[%c0_6, %c0_7, %c0_8], %19 {strides = array<i32>} : memref<1x4x128xf32, #tpu.memory_space<vmem>>, vector<1x4x128xf32>,
    return
  }
  func.func @transform_0(%arg0: i32, %arg1: i32) -> i32 {
    %c0_i32 = arith.constant 0 : i32
    %c0_i32_0 = arith.constant 0 : i32
    return %c0_i32 : i32
  }
  func.func @transform_1(%arg0: i32, %arg1: i32) -> (i32, i32, i32) {
    %c0_i32 = arith.constant 0 : i32
    %c0_i32_0 = arith.constant 0 : i32
    return %arg0, %c0_i32, %arg1 : i32, i32, i32
  }
  func.func @transform_2(%arg0: i32, %arg1: i32) -> (i32, i32, i32) {
    %c0_i32 = arith.constant 0 : i32
    %c0_i32_0 = arith.constant 0 : i32
    return %arg0, %c0_i32, %arg1 : i32, i32, i32
  }
  func.func @transform_3(%arg0: i32, %arg1: i32) -> (i32, i32, i32) {
    %c0_i32 = arith.constant 0 : i32
    %c0_i32_0 = arith.constant 0 : i32
    return %arg0, %c0_i32, %arg1 : i32, i32, i32
  }
}

</mosaic_0001>

<bundles_post_ra>
// kernel: attention_block_forward.5
= control target key start
LH: loop header
LB: loop body
LE: loop exit
PB: predicated region body
PF: predicated region fallthrough
CT: control target
= control target key end

     0   :  { %8 = vsyncpa [#allocation3], 0  ;;  %s531_s12 = smov 0   ;;  %s533_s13 = smov 0   ;;  %s615_s0 = inlined_call_operand.vmem [shape: f32[2], index: 0, kind: input, shape index: {}]   ;;  %s616_s1 = inlined_call_operand.vmem [shape: f32[2,4,256], index: 1, kind: input, shape index: {}]   ;;  %s617_s2 = inlined_call_operand.vmem [shape: f32[2,1,256], index: 2, kind: input, shape index: {}]   ;;  %s618_s3 = inlined_call_operand.vmem [shape: f32[2,4,256], index: 3, kind: output, shape index: {}]  }
   0x1   :  { %s535_s14 = smov 0   ;;  %s537_s15 = smov 0  }
   0x2   :  { %s539_s16 = smov 0  }
   0x3 LB: > { %s380_s17 = sadd.s32 4294967295, %s508_s16   ;;  %s23_s18 = sadd.s32 1, %s500_s14  ;;  %s508_s16 = sphi %s539_s16, %s14_s16   ;;  %s504_s15 = sphi %s537_s15, %s624_s15   ;;  %s500_s14 = sphi %s535_s14, %s623_s14   ;;  %s496_s13 = sphi %s533_s13, %s622_s13   ;;  %s492_s12 = sphi %s531_s12, %s621_s12  }
   0x4   : > { %p24_p0 = scmp.ge.s32.totalorder %s23_s18, 2  ;;  %s26_s19 = sadd.s32 1, %s504_s15 }
   0x5   : > { %p382_p1 = scmp.ge.s32.totalorder %s508_s16, 1  ;;  %p136_p2 = scmp.lt.s32.totalorder %s508_s16, 5 }
   0x6   : > { %s626_s18 = smov (%p24_p0, %s23_s18), 0  ;;  %s628_s19 = smov (!%p24_p0, %s26_s19), %s504_s15 }
   0x7   : > { %p564_p3 = pnand %p382_p1, %p136_p2  ;;  %p28_p4 = scmp.ge.s32.totalorder %s628_s19, 2 }
   0x8   : > { %p568_p5 = scmp.eq.s32.totalorder %s380_s17, 0  ;;  %s149_s24 = sshll.u32 %s615_s0, 4  ;;  %s150_s24 = int_to_ptr.vmem [resolvable:$true] %s149_s24 }
   0x9   : > { %p400_p6 = pneg %p564_p3  ;;  %s630_s19 = smov (%p28_p4, %s628_s19), 0 }
   0xa   : > { %s451_s25 = scalar_lea.vmem %s150_s24, 16  ;;  %p459_p12 = scmp.lt.s32.totalorder %s150_s24, %s150_s24 }
   0xb   : > { %p401_p7 = pnand %p568_p5, %p400_p6  ;;  %p452_p8 = scmp.ne.s32.totalorder %s150_s24, %s451_s25 }
   0xc   : > { %p460_p13 = scmp.lt.s32.totalorder %s451_s25, %s451_s25 }
   0xd   : > { %p453_p9 = pneg %p401_p7 }
   0xe   : > { %p461_p0 = por %p460_p13, %p459_p12 }
   0xf   : > { %p454_p10 = pnand %p453_p9, %p452_p8 }
  0x11   : > { %p455_p11 = pneg %p454_p10 }
  0x13   : > { %p462_p1 = pnand %p461_p0, %p455_p11 }
  0x15   : > { %465 = shalt.err (!%p462_p1)
}
  0x16   : > { %s510_s26 = smov [#allocation2]   ;;  %183 = sbr.rel (%p564_p3) target bundleno = 79 (0x4f), region = 32 }
  0x17   : > { %403 = dma.vmem_to_smem (!%p401_p7), %s150_s24, 16, %s510_s26, [#allocation3]  }
  0x1b   : > { %487 = dma.done.wait (%p568_p5), [#allocation3], 16  }
  0x1c   : > { %489 = vsyncadd (%p568_p5), [#allocation3], 4294967280 }
  0x1d   : > { %189 = sfence }
  0x1e   : > { %p221_p2 = scmp.lt.s32.totalorder %s496_s13, 1  ;;  %p223_p4 = scmp.lt.s32.totalorder %s492_s12, 1  ;;  %v259_v8 = vlaneseq }
  0x1f   : > { %s244_s27 = sld [smem:[#allocation2]] }
  0x20   : > { %s632_s13 = smov (!%p221_p2, %s496_s13), 1  ;;  %s634_s12 = smov (!%p223_p4, %s492_s12), 1  ;;  %v260_v9 = vshrl.u32 %v259_v8, 7 }
  0x21   : > { %s387_s28 = sshll.u32 %s632_s13, 1  ;;  %s392_s29 = sld [smem:[#allocation2 + $0x1]] }
  0x22   : > { %s226_s30 = sadd.s32 %s387_s28, %s634_s12  ;;  %v261_v10 = vsub.s32 0, %v260_v9 }
  0x23   : > { %s235_s6 = scalar_lea.vmem %s617_s2, %s226_s30  ;;  %s388_s7 = sshll.u32 %s226_s30, 2 }
  0x24   : > { %v246_v0 = vld [vmem:[%s235_s6] sm:$0x1]  ;;  %s228_s10 = scalar_lea.vmem %s616_s1, %s388_s7  ;;  %s243_s13 = scalar_lea.vmem %s618_s3, %s388_s7 }
  0x25   : > { %v247_v1 = vstv %s244_s27  ;;  %v257_v12 = vld [vmem:[%s228_s10] sm:$0xf] }
  0x26   : > { %v248_v2 = vmul.f32 %v247_v1, %v246_v0 }
  0x27   : > { %v249_v3 = vstv %s392_s29 }
  0x28   : > { %v250_v4 = vadd.f32 %v249_v3, %v248_v2 }
  0x2a   : > { %v393_v5 = vmul.f32 -1.442695, %v250_v4 }
  0x2c   : > { %447 = vpow2.f32 %v393_v5 }
  0x39   : > { %v448_v6 = vpop.eup %447 }
  0x3a   : > { %v254_v7 = vadd.f32 1.0, %v448_v6 }
  0x3c   : > { %449 = vrcp.f32 %v254_v7 }
  0x49   : > { %v450_v11 = vpop.eup %449 }
  0x4a   : > { %v262_v13 = vrot.slane %v450_v11, %v261_v10 }
  0x4c   : > { %v264_v14 = vmul.f32 %v262_v13, %v257_v12 }
  0x4e   : > { %265 = vst [vmem:[%s243_s13] sm:$0xf] %v264_v14 }
  0x4f PF: > { %s14_s16 = sadd.s32 1, %s508_s16   ;;  %s621_s12 = smov %s500_s14 }
  0x50   : > { %p11_p3 = scmp.ge.s32.totalorder %s14_s16, 6   ;;  %s622_s13 = smov %s504_s15 }
  0x51   : > { %s623_s14 = smov %s626_s18  ;;  %s624_s15 = smov %s630_s19 }
  0x52   :  { %13 = sbr.rel (!%p11_p3) target bundleno = 3 (0x3), region = 70 }
  0x57   :  { %293 = vsyncpa [#allocation3], 1 }
  0x58   :  { %295 = vsyncpa [#allocation3 + $0x1], 1 }

// kernel: attention_block_forward.3
= control target key start
LH: loop header
LB: loop body
LE: loop exit
PB: predicated region body
PF: predicated region fallthrough
CT: control target
= control target key end

     0   :  { %s686_s15 = smov 0   ;;  %s688_s16 = smov 0   ;;  %s754_s0 = inlined_call_operand.vmem [shape: f32[2,4,256], index: 0, kind: input, shape index: {}]   ;;  %s755_s1 = inlined_call_operand.vmem [shape: f32[2,4,256], index: 1, kind: input, shape index: {}]   ;;  %s756_s2 = inlined_call_operand.vmem [shape: f32[8,4], index: 2, kind: input, shape index: {}]   ;;  %s757_s3 = inlined_call_operand.vmem [shape: f32[8,4], index: 3, kind: input, shape index: {}]   ;;  %s758_s4 = inlined_call_operand.vmem [shape: f32[2,2,32,1], index: 4, kind: output, shape index: {}]  }
   0x1   :  { %s690_s17 = smov 0   ;;  %s692_s18 = smov 0  }
   0x2   :  { %s694_s19 = smov 0  }
   0x3 LB: > { %s23_s20 = sadd.s32 1, %s649_s17  ;;  %s26_s21 = sadd.s32 1, %s653_s18  ;;  %s657_s19 = sphi %s694_s19, %s14_s19   ;;  %s653_s18 = sphi %s692_s18, %s762_s18   ;;  %s649_s17 = sphi %s690_s17, %s761_s17   ;;  %s645_s16 = sphi %s688_s16, %s760_s16   ;;  %s641_s15 = sphi %s686_s15, %s759_s15  }
   0x4   : > { %p24_p0 = scmp.ge.s32.totalorder %s23_s20, 2  ;;  %p549_p1 = scmp.ge.s32.totalorder %s657_s19, 1 }
   0x5   : > { %p196_p2 = scmp.lt.s32.totalorder %s657_s19, 5 }
   0x6   : > { %s764_s20 = smov (%p24_p0, %s23_s20), 0  ;;  %s766_s21 = smov (!%p24_p0, %s26_s21), %s653_s18 }
   0x7   : > { %p197_p3 = pnand %p549_p1, %p196_p2  ;;  %p28_p4 = scmp.ge.s32.totalorder %s766_s21, 2 }
   0x8   : > { %p237_p5 = scmp.lt.s32.totalorder (!%p197_p3), %s645_s16, 1  ;;  %p239_p6 = scmp.lt.s32.totalorder (!%p197_p3), %s641_s15, 1 }
   0x9   : > { %s768_s21 = smov (%p28_p4, %s766_s21), 0  ;;  %200 = sbr.rel (%p197_p3) target bundleno = 358 (0x166), region = 36 }
   0xe   : > { %v659_v0 = vmov 0.0   ;;  %s770_s16 = smov (!%p237_p5, %s645_s16), 1  ;;  %vm660_vm0 = vmmov 0   ;;  %s772_s15 = smov (!%p239_p6, %s641_s15), 1  ;;  %vm269_vm1 = vcmask 1043456   ;;  %v264_v1 = vld [vmem:[%s756_s2] sm:$0xff] }
   0xf   : > { %567 = vmatprep.subr.mxu0 %v659_v0  ;;  %572 = vmatprep.subr.mxu1 %v659_v0  ;;  %s550_s22 = sshll.u32 %s770_s16, 1  ;;  %vm265_vm2 = vcmask 31744   ;;  %v343_v2 = vld [vmem:[%s757_s3] sm:$0xff]  ;;  %s554_s9 = sshll.u32 %s772_s15, 2  ;;  %vm430_vm3 = vcmask 7168  }
  0x10   : > { %569 = vmatprep.mubr.msk.f32.mxu0 %vm660_vm0, %v659_v0  ;;  %574 = vmatprep.mubr.msk.f32.mxu1 %vm660_vm0, %v659_v0  ;;  %s242_s23 = sadd.s32 %s550_s22, %s772_s15  ;;  %s555_s10 = sshll.u32 %s770_s16, 3 }
  0x11   : > { %s551_s24 = sshll.u32 %s242_s23, 2  ;;  %s259_s11 = sadd.s32 %s555_s10, %s554_s9 }
  0x12   : > { %s244_s27 = scalar_lea.vmem %s754_s0, %s551_s24  ;;  %s252_s30 = scalar_lea.vmem %s755_s1, %s551_s24 }
  0x13   : > { %v262_v3 = vld [vmem:[%s244_s27] sm:$0xf]  ;;  %s556_s12 = sshll.u32 %s259_s11, 3 }
  0x14   : > { %v263_v4 = vld [vmem:[%s252_s30] sm:$0xf]  ;;  %568 = vmatpush3.msk.msra.mxu0 %vm269_vm1, %v262_v3  ;;  %s261_s22 = scalar_lea.vmem %s758_s4, %s556_s12 }
  0x15   : > { %573 = vmatpush3.msk.msra.mxu1 %vm269_vm1, %v263_v4  ;;  %570 = vmatmul.mubr.msk.f32.vlgmr.msra.gmra.mxu0 %vm265_vm2, %v264_v1 }
  0x16   : > { %575 = vmatmul.mubr.msk.f32.vlgmr.msra.gmra.mxu1 %vm265_vm2, %v343_v2 }
  0xd5   : > { %v339_v5 = vpop.f32.mrf.mxu0 }
  0xd6   : > { %v416_v6 = vpop.f32.mrf.mxu1  ;;  %420 = vadd.xlane.f32.xlu0 %v339_v5  ;;  %v422_v10 = vmul.f32 %v339_v5, %v339_v5 }
  0xd7   : > { %425 = vadd.xlane.f32.xlu1 %v416_v6  ;;  %v571_v7 = vpop.f32.mrf.mxu0  ;;  %v427_v9 = vmul.f32 %v416_v6, %v416_v6 }
  0xd8   : > { %v576_v8 = vpop.f32.mrf.mxu1 }
  0xda   : > { %423 = vadd.xlane.f32.xlu0 %v422_v10 }
  0xdb   : > { %428 = vadd.xlane.f32.xlu1 %v427_v9 }
 0x15f   : > { %v421_v12 = vpop.xlane.xlu0 %420 }
 0x160   : > { %v426_v11 = vpop.xlane.xlu1 %425  ;;  %431 = vst.msk [vmem:[%s261_s22] sm:$0xff] %vm430_vm3, %v421_v12 }
 0x161   : > { %433 = vst.msk [vmem:[%s261_s22 + $0x10] sm:$0xff] %vm430_vm3, %v426_v11 }
 0x163   : > { %v424_v14 = vpop.xlane.xlu0 %423 }
 0x164   : > { %v429_v13 = vpop.xlane.xlu1 %428  ;;  %432 = vst.msk [vmem:[%s261_s22 + $0x8] sm:$0xff] %vm430_vm3, %v424_v14 }
 0x165   : > { %434 = vst.msk [vmem:[%s261_s22 + $0x18] sm:$0xff] %vm430_vm3, %v429_v13 }
 0x166 PF: > { %s14_s19 = sadd.s32 1, %s657_s19   ;;  %s759_s15 = smov %s649_s17 }
 0x167   : > { %p11_p7 = scmp.ge.s32.totalorder %s14_s19, 6   ;;  %s760_s16 = smov %s653_s18 }
 0x168   : > { %s761_s17 = smov %s764_s20  ;;  %s762_s18 = smov %s768_s21 }
 0x169   :  { %13 = sbr.rel (!%p11_p7) target bundleno = 3 (0x3), region = 69 }

// kernel: attention_block_forward.4
= control target key start
LH: loop header
LB: loop body
LE: loop exit
PB: predicated region body
PF: predicated region fallthrough
CT: control target
= control target key end

     0   :  { %s928_s24 = smov 0   ;;  %s930_s25 = smov 0   ;;  %s1005_s0 = inlined_call_operand.vmem [shape: f32[2,4,256], index: 0, kind: input, shape index: {}]   ;;  %s1006_s1 = inlined_call_operand.vmem [shape: f32[2,4,256], index: 1, kind: input, shape index: {}]   ;;  %s1007_s2 = inlined_call_operand.vmem [shape: f32[8,4], index: 2, kind: input, shape index: {}]   ;;  %s1008_s3 = inlined_call_operand.vmem [shape: f32[8,4], index: 3, kind: input, shape index: {}]   ;;  %s1009_s4 = inlined_call_operand.vmem [shape: f32[8,1], index: 4, kind: input, shape index: {}]   ;;  %s1010_s5 = inlined_call_operand.vmem [shape: f32[1,8], index: 5, kind: input, shape index: {}]   ;;  %s1011_s6 = inlined_call_operand.vmem [shape: f32[2,1,256], index: 6, kind: output, shape index: {0}]   ;;  %s1012_s7 = inlined_call_operand.vmem [shape: f32[2,2,2,1], index: 7, kind: output, shape index: {1}]  }
   0x1   :  { %s932_s26 = smov 0   ;;  %s934_s27 = smov 0  }
   0x2   :  { %s936_s28 = smov 0  }
   0x3 LB: > { %s27_s29 = sadd.s32 1, %s875_s26  ;;  %s30_s30 = sadd.s32 1, %s879_s27  ;;  %s883_s28 = sphi %s936_s28, %s18_s28   ;;  %s879_s27 = sphi %s934_s27, %s1016_s27   ;;  %s875_s26 = sphi %s932_s26, %s1015_s26   ;;  %s871_s25 = sphi %s930_s25, %s1014_s25   ;;  %s867_s24 = sphi %s928_s24, %s1013_s24  }
   0x4   : > { %p28_p0 = scmp.ge.s32.totalorder %s27_s29, 2  ;;  %p765_p1 = scmp.ge.s32.totalorder %s883_s28, 1 }
   0x5   : > { %p276_p2 = scmp.lt.s32.totalorder %s883_s28, 5 }
   0x6   : > { %s1018_s29 = smov (%p28_p0, %s27_s29), 0  ;;  %s1020_s30 = smov (!%p28_p0, %s30_s30), %s879_s27 }
   0x7   : > { %p277_p3 = pnand %p765_p1, %p276_p2  ;;  %p32_p4 = scmp.ge.s32.totalorder %s1020_s30, 2 }
   0x8   : > { %p329_p5 = scmp.lt.s32.totalorder (!%p277_p3), %s871_s25, 1  ;;  %p331_p6 = scmp.lt.s32.totalorder (!%p277_p3), %s867_s24, 1 }
   0x9   : > { %s1022_s30 = smov (%p32_p4, %s1020_s30), 0  ;;  %280 = sbr.rel (%p277_p3) target bundleno = 560 (0x230), region = 44 }
   0xe   : > { %v885_v0 = vmov 0.0   ;;  %v518_v1 = vld [vmem:[%s1009_s4] sm:$0xff]  ;;  %s1024_s25 = smov (!%p329_p5, %s871_s25), 1  ;;  %vm886_vm0 = vmmov 0   ;;  %s1026_s24 = smov (!%p331_p6, %s867_s24), 1  ;;  %v887_v2 = vmov 0  }
   0xf   : > { %786 = vmatprep.subr.mxu0 %v885_v0  ;;  %791 = vmatprep.subr.mxu1 %v885_v0  ;;  %s766_s10 = sshll.u32 %s1024_s25, 1  ;;  %vm368_vm1 = vcmask 1043456   ;;  %v363_v3 = vld [vmem:[%s1008_s3] sm:$0xff]  ;;  %vm364_vm2 = vcmask 31744   ;;  %vm527_vm3 = vcmask 64512   ;;  %vm602_vm4 = vcmask 1040384  }
  0x10   : > { %788 = vmatprep.mubr.msk.f32.mxu0 %vm886_vm0, %v885_v0  ;;  %793 = vmatprep.mubr.msk.f32.mxu1 %vm886_vm0, %v885_v0  ;;  %s963_s11 = sadd.s32 %s766_s10, %s1026_s24  ;;  %v362_v4 = vld [vmem:[%s1007_s2] sm:$0xff]  ;;  %vm614_vm5 = vcmask 1024  }
  0x11   : > { %844 = vset.pattern.permute.xlu0 %v887_v2  ;;  %s767_s12 = sshll.u32 %s963_s11, 2  ;;  %v526_v15 = vld [vmem:[%s1010_s5] sm:$0x1]  ;;  %s351_s9 = scalar_lea.vmem %s1011_s6, %s963_s11 }
  0x12   : > { %521 = vperm.xlu0 %844, %v518_v1   ;;  %s344_s15 = scalar_lea.vmem %s1006_s1, %s767_s12  ;;  %s336_s18 = scalar_lea.vmem %s1005_s0, %s767_s12 }
  0x13   : > { %v361_v5 = vld [vmem:[%s344_s15] sm:$0xf]  ;;  %s772_s10 = sshll.u32 %s963_s11, 1 }
  0x14   : > { %v360_v6 = vld [vmem:[%s336_s18] sm:$0xf]  ;;  %787 = vmatpush3.msk.msra.mxu0 %vm368_vm1, %v361_v5  ;;  %s359_s14 = scalar_lea.vmem %s1012_s7, %s772_s10 }
  0x15   : > { %792 = vmatpush3.msk.msra.mxu1 %vm368_vm1, %v360_v6  ;;  %789 = vmatmul.mubr.msk.f32.vlgmr.msra.gmra.mxu0 %vm364_vm2, %v363_v3 }
  0x16   : > { %794 = vmatmul.mubr.msk.f32.vlgmr.msra.gmra.mxu1 %vm364_vm2, %v362_v4  ;;  %796 = vmatprep.subr.mxu0 %v885_v0 }
  0x17   : > { %798 = vmatprep.mubr.msk.f32.mxu0 %vm886_vm0, %v885_v0 }
  0x8d   : > { %v522_v7 = vpop.permute.xlu0 %521 }
  0xd5   : > { %v438_v8 = vpop.f32.mrf.mxu0 }
  0xd6   : > { %v514_v9 = vpop.f32.mrf.mxu1 }
  0xd7   : > { %v515_v10 = vadd.f32 %v514_v9, %v438_v8  ;;  %v790_v11 = vpop.f32.mrf.mxu0 }
  0xd8   : > { %v795_v12 = vpop.f32.mrf.mxu1 }
  0xd9   : > { %v524_v13 = vadd.f32 %v522_v7, %v515_v10 }
  0xdb   : > { %v525_v14 = vmax.f32 %v524_v13, 0.0 }
  0xdd   : > { %797 = vmatpush3.msra.mxu0 %v525_v14 }
  0xde   : > { %799 = vmatmul.mubr.msk.f32.vlgmr.msra.gmra.mxu0 %vm527_vm3, %v526_v15 }
 0x19e   : > { %v597_v16 = vpop.f32.mrf.mxu0 }
 0x19f   : > { %601 = vst [vmem:[%s351_s9] sm:$0x1] %v597_v16  ;;  %v606_v17 = vmul.f32 %v597_v16, %v597_v16  ;;  %v603_v18 = vsel %vm602_vm4, %v597_v16, 0.0 }
 0x1a0   : > { %v800_v19 = vpop.f32.mrf.mxu0  ;;  %604 = vadd.xlane.f32.xlu1 %v603_v18 }
 0x1a1   : > { %v607_v20 = vsel %vm602_vm4, %v606_v17, 0.0 }
 0x1a2   : > { %608 = vadd.xlane.f32.xlu0 %v607_v20 }
 0x229   : > { %v605_v23 = vpop.xlane.xlu1 %604 }
 0x22b   : > { %v609_v21 = vpop.xlane.xlu0 %608 }
 0x22c   : > { %v611_v22 = vrot.slane %v609_v21, 7 }
 0x22e   : > { %v613_v24 = vsel %vm602_vm4, %v605_v23, %v611_v22 }
 0x22f   : > { %615 = vst.msk [vmem:[%s359_s14] sm:$0x3] %vm614_vm5, %v613_v24 }
 0x230 PF: > { %s18_s28 = sadd.s32 1, %s883_s28   ;;  %s1013_s24 = smov %s875_s26 }
 0x231   : > { %p15_p7 = scmp.ge.s32.totalorder %s18_s28, 6   ;;  %s1014_s25 = smov %s879_s27 }
 0x232   : > { %s1015_s26 = smov %s1018_s29  ;;  %s1016_s27 = smov %s1022_s30 }
 0x233   :  { %17 = sbr.rel (!%p15_p7) target bundleno = 3 (0x3), region = 89 }

</bundles_post_ra>
